<compile_context>
chip_gen: v7x
topology: tpu7x:2x2x1
jax: 0.10.0
libtpu: 0.0.40
codegen_flags: <defaults>
</compile_context>

<pallas_src>
import functools

import jax
import jax.numpy as jnp
from jax.experimental import pallas as pl
from jax.experimental.pallas import tpu as pltpu

BN_EPS = 1e-5

# bf16 MXU operands: ~2-3x matmul throughput on v6e/v7x, fewer passes on v5e,
# half the weight DMA.  BN renormalizes each conv output, so the precision
# loss stays ~1e-2; the self-test tolerance is relaxed accordingly.
MXU_DTYPE = jnp.bfloat16


def resblock_kernel(x_ref, w1_ref, b1_ref, g1_ref, be1_ref,
                    w2_ref, b2_ref, g2_ref, be2_ref, out_ref,
                    *, ch, img_h, inv_count):
    """Fused ResidualBlock: conv1+BN1+ReLU -> conv2+BN2 -> +x -> ReLU.

    Folded lane-dense layout: activations are (N, H, W*C) with W*C on lanes.

    x_ref      : (N, H, W*C)   f32   input / residual
    w{1,2}_ref : (W*C, 3*W*C)  bf16  banded conv weights (one band per kh tap;
                                     kw taps and W-padding live inside the band)
    b/g/be     : (1, W*C)      f32   conv bias / BN gamma / BN beta, tiled over W
    out_ref    : (N, H, W*C)   f32
    """
    N, H, WC = x_ref.shape
    NH = N * H
    x2d = x_ref[...].reshape(NH, WC)                       # f32 residual/input

    # Per-channel "sum + rebroadcast" matrix across the W-folded lanes, with
    # the 1/count normalization folded in.  Generated in-kernel -> no DMA.
    li = jax.lax.broadcasted_iota(jnp.int32, (WC, WC), 0) % ch
    lj = jax.lax.broadcasted_iota(jnp.int32, (WC, WC), 1) % ch
    chmat = jnp.where(li == lj, jnp.float32(inv_count), jnp.float32(0.0))

    # Boundary-row masks for the kh=0 / kh=2 taps (shifted one row along H).
    row = jax.lax.broadcasted_iota(jnp.int32, (NH, WC), 0)
    first_row = (row % img_h) == 0
    last_row = (row % img_h) == (img_h - 1)

    def conv_bn(inp2d, w_ref, b_ref, g_ref, be_ref):
        # 3x3 conv == one banded bf16 matmul; combine the 3 kh lane-slices
        # with XLU sublane rolls along the (N*H) row axis.  Rolling across an
        # image boundary is harmless because that row is masked to zero.
        p = jnp.dot(inp2d.astype(MXU_DTYPE), w_ref[...],
                    preferred_element_type=jnp.float32)        # (NH, 3*WC)
        top = jnp.where(first_row, 0.0,
                        pltpu.roll(p[:, :WC], shift=1, axis=0))         # kh=0
        mid = p[:, WC:2 * WC]                                            # kh=1
        bot = jnp.where(last_row, 0.0,
                        pltpu.roll(p[:, 2 * WC:], shift=NH - 1, axis=0)) # kh=2
        acc = top + mid + bot + b_ref[...]

        # BatchNorm2d (training-mode batch stats), all in f32.  Both
        # per-channel reductions ride one (2, WC) @ (WC, WC) matmul; the
        # 1/count divide is already folded into chmat.
        stats = jnp.concatenate(
            [jnp.sum(acc, axis=0, keepdims=True),
             jnp.sum(acc * acc, axis=0, keepdims=True)], axis=0)   # (2, WC)
        bc = jnp.dot(stats, chmat, preferred_element_type=jnp.float32)
        mean, ex2 = bc[0:1, :], bc[1:2, :]
        var = ex2 - mean * mean
        scale = g_ref[...] * jax.lax.rsqrt(var + BN_EPS)
        shift = be_ref[...] - mean * scale
        return acc * scale + shift

    h1 = jnp.maximum(conv_bn(x2d, w1_ref, b1_ref, g1_ref, be1_ref), 0.0)
    h2 = conv_bn(h1, w2_ref, b2_ref, g2_ref, be2_ref)
    out = jnp.maximum(h2 + x2d, 0.0)
    out_ref[...] = out.reshape(N, H, WC).astype(out_ref.dtype)


def _make_band_weight(wt, W):
    """PyTorch OIHW (Cout, Cin, 3, 3) -> banded (W*Cin, 3*W*Cout), bf16.

    band_kh[win*Cin + ci, wout*Cout + co] = wt[co, ci, kh, kw] for
    win == wout + kw - 1; out-of-range taps (the W-direction zero padding)
    simply have no entry.  The three kh bands are concatenated along axis 1.
    """
    cout, cin, kh_n, kw_n = wt.shape
    bands = []
    for kh in range(kh_n):
        b = jnp.zeros((W, cin, W, cout), jnp.float32)
        for kw in range(kw_n):
            shift = jnp.eye(W, k=1 - kw, dtype=jnp.float32)       # [win, wout]
            tap = wt[:, :, kh, kw].T.astype(jnp.float32)          # (Cin, Cout)
            b = b + shift[:, None, :, None] * tap[None, :, None, :]
        bands.append(b.reshape(W * cin, W * cout))
    return jnp.concatenate(bands, axis=1).astype(MXU_DTYPE)


def prepare_params(params, W):
    """Fold weights / tile per-channel vectors ONCE, outside the jitted path."""
    C = params["w1"].shape[1]
    tile = lambda v: jnp.tile(v.reshape(1, C).astype(jnp.float32), (1, W))
    return {
        "w1": _make_band_weight(params["w1"], W),
        "w2": _make_band_weight(params["w2"], W),
        "b1": tile(params["b1"]), "g1": tile(params["g1"]), "be1": tile(params["be1"]),
        "b2": tile(params["b2"]), "g2": tile(params["g2"]), "be2": tile(params["be2"]),
    }


@jax.jit
def residual_block(x_nchw, folded):
    N, C, H, W = x_nchw.shape
    WC = W * C
    assert WC % 128 == 0, "folded lane dim W*C must be a multiple of 128"
    assert folded["w1"].shape == (WC, 3 * WC), "Cin must equal Cout (stride=1)"

    # NCHW -> folded lane-dense (N, H, W*C); no spatial padding materialized.
    # TODO(synk): when stacking blocks, keep activations in this folded layout
    # between blocks instead of transposing NCHW<->folded on every call.
    x = jnp.transpose(x_nchw, (0, 2, 3, 1)).reshape(N, H, WC).astype(jnp.float32)

    vmem = pl.BlockSpec(memory_space=pltpu.MemorySpace.VMEM)
    out = pl.pallas_call(
        functools.partial(resblock_kernel, ch=C, img_h=H,
                          inv_count=1.0 / float(N * H * W)),
        out_shape=jax.ShapeDtypeStruct((N, H, WC), jnp.float32),
        in_specs=[vmem] * 9,
        out_specs=vmem,
        input_output_aliases={0: 0},   # reuse x's folded HBM buffer for out
    )(x, folded["w1"], folded["b1"], folded["g1"], folded["be1"],
      folded["w2"], folded["b2"], folded["g2"], folded["be2"])

    # TODO(synk): for production shapes (large N*H, or C big enough to put
    # channels directly on lanes) add a BlockSpec grid over (batch, H-row
    # blocks) with a two-pass cross-tile BN reduction, mark the independent
    # axis "parallel" (v7x megacore), and budget VMEM via vmem_limit_bytes
    # (64 MiB physical on v7x).  This single-invocation design targets
    # W*C ~ 128 problems that fit VMEM whole.
    return jnp.transpose(out.reshape(N, H, W, C), (0, 3, 1, 2))


def ref_residual_block(x, params):
    """Pure-JAX f32 reference (matches PyTorch training-mode forward)."""
    def conv(x, w, b):
        y = jax.lax.conv_general_dilated(
            x, w, window_strides=(1, 1), padding=((1, 1), (1, 1)),
            dimension_numbers=("NCHW", "OIHW", "NCHW"))
        return y + b[None, :, None, None]

    def bn(x, g, be):
        mean = jnp.mean(x, axis=(0, 2, 3), keepdims=True)
        var = jnp.mean((x - mean) ** 2, axis=(0, 2, 3), keepdims=True)
        return ((x - mean) * jax.lax.rsqrt(var + BN_EPS)
                * g[None, :, None, None] + be[None, :, None, None])

    h = jax.nn.relu(bn(conv(x, params["w1"], params["b1"]),
                       params["g1"], params["be1"]))
    h2 = bn(conv(h, params["w2"], params["b2"]), params["g2"], params["be2"])
    return jax.nn.relu(h2 + x)


def init_params(key, in_ch, out_ch):
    ks = jax.random.split(key, 4)
    scale1 = 1.0 / jnp.sqrt(in_ch * 9.0)
    scale2 = 1.0 / jnp.sqrt(out_ch * 9.0)
    return {
        "w1": scale1 * jax.random.normal(ks[0], (out_ch, in_ch, 3, 3), jnp.float32),
        "b1": scale1 * jax.random.normal(ks[1], (out_ch,), jnp.float32),
        "g1": jnp.ones((out_ch,), jnp.float32),
        "be1": jnp.zeros((out_ch,), jnp.float32),
        "w2": scale2 * jax.random.normal(ks[2], (out_ch, out_ch, 3, 3), jnp.float32),
        "b2": scale2 * jax.random.normal(ks[3], (out_ch,), jnp.float32),
        "g2": jnp.ones((out_ch,), jnp.float32),
        "be2": jnp.zeros((out_ch,), jnp.float32),
    }


if __name__ == "__main__":
    key = jax.random.PRNGKey(0)
    kx, kp = jax.random.split(key)

    # NOTE: this kernel reproduces the forward activation only; PyTorch's
    # BatchNorm2d running_mean/running_var state updates are not emulated.
    N, C, H, W = 2, 8, 16, 16          # W * C == 128 -> fully lane-dense
    x = jax.random.normal(kx, (N, C, H, W), jnp.float32)
    params = init_params(kp, C, C)

    folded = prepare_params(params, W)             # host-side, once
    out = jax.block_until_ready(residual_block(x, folded))
    ref = ref_residual_block(x, params)

    assert out.shape == (N, C, H, W)
    max_err = float(jnp.max(jnp.abs(out - ref)))
    # bf16 MXU operands -> relaxed tolerance (BN renormalization absorbs most
    # of it; errors are ~1e-2 on O(1) activations).
    assert jnp.allclose(out, ref, atol=8e-2, rtol=8e-2), max_err
    print("KERNEL_OK")
</pallas_src>

<mosaic_0001>
module attributes {stable_mosaic.version = 11 : i64} {
  func.func @resblock_kernel(%arg0: memref<2x16x128xf32, #tpu.memory_space<vmem>>, %arg1: memref<128x384xbf16, #tpu.memory_space<vmem>>, %arg2: memref<1x128xf32, #tpu.memory_space<vmem>>, %arg3: memref<1x128xf32, #tpu.memory_space<vmem>>, %arg4: memref<1x128xf32, #tpu.memory_space<vmem>>, %arg5: memref<128x384xbf16, #tpu.memory_space<vmem>>, %arg6: memref<1x128xf32, #tpu.memory_space<vmem>>, %arg7: memref<1x128xf32, #tpu.memory_space<vmem>>, %arg8: memref<1x128xf32, #tpu.memory_space<vmem>>, %arg9: memref<2x16x128xf32, #tpu.memory_space<vmem>>) attributes {dimension_semantics = [], scalar_prefetch = 0 : i64, scratch_operands = 0 : i64, tpu.core_type = #tpu.core_type<tc>} {
    %c0 = arith.constant 0 : index
    %c0_0 = arith.constant 0 : index
    %c0_1 = arith.constant 0 : index
    %0 = vector.load %arg0[%c0, %c0_0, %c0_1] : memref<2x16x128xf32, #tpu.memory_space<vmem>>, vector<2x16x128xf32>
    %1 = vector.shape_cast %0 : vector<2x16x128xf32> to vector<32x128xf32>
    %2 = tpu.iota {dimensions = array<i32: 0>} : vector<128x128xi32>
    %c8_i32 = arith.constant 8 : i32
    %c0_i32 = arith.constant 0 : i32
    %3 = arith.cmpi eq, %c8_i32, %c0_i32 : i32
    %c1_i32 = arith.constant 1 : i32
    %4 = arith.select %3, %c1_i32, %c8_i32 : i32
    %5 = vector.broadcast %4 : i32 to vector<128x128xi32>
    %6 = arith.remsi %2, %5 : vector<128x128xi32>
    %c0_i32_2 = arith.constant 0 : i32
    %7 = vector.broadcast %c0_i32_2 : i32 to vector<128x128xi32>
    %8 = arith.cmpi ne, %6, %7 : vector<128x128xi32>
    %c0_i32_3 = arith.constant 0 : i32
    %9 = vector.broadcast %c0_i32_3 : i32 to vector<128x128xi32>
    %10 = arith.cmpi slt, %6, %9 : vector<128x128xi32>
    %c0_i32_4 = arith.constant 0 : i32
    %11 = arith.cmpi slt, %4, %c0_i32_4 : i32
    %12 = vector.broadcast %11 : i1 to vector<128x128xi1>
    %13 = vector.broadcast %12 : vector<128x128xi1> to vector<128x128xi1>
    %14 = arith.xori %10, %13 : vector<128x128xi1>
    %15 = arith.andi %14, %8 : vector<128x128xi1>
    %16 = vector.broadcast %4 : i32 to vector<128x128xi32>
    %17 = arith.addi %6, %16 : vector<128x128xi32>
    %18 = arith.select %15, %17, %6 : vector<128x128xi1>, vector<128x128xi32>
    %19 = tpu.iota {dimensions = array<i32: 1>} : vector<128x128xi32>
    %c8_i32_5 = arith.constant 8 : i32
    %c0_i32_6 = arith.constant 0 : i32
    %20 = arith.cmpi eq, %c8_i32_5, %c0_i32_6 : i32
    %c1_i32_7 = arith.constant 1 : i32
    %21 = arith.select %20, %c1_i32_7, %c8_i32_5 : i32
    %22 = vector.broadcast %21 : i32 to vector<128x128xi32>
    %23 = arith.remsi %19, %22 : vector<128x128xi32>
    %c0_i32_8 = arith.constant 0 : i32
    %24 = vector.broadcast %c0_i32_8 : i32 to vector<128x128xi32>
    %25 = arith.cmpi ne, %23, %24 : vector<128x128xi32>
    %c0_i32_9 = arith.constant 0 : i32
    %26 = vector.broadcast %c0_i32_9 : i32 to vector<128x128xi32>
    %27 = arith.cmpi slt, %23, %26 : vector<128x128xi32>
    %c0_i32_10 = arith.constant 0 : i32
    %28 = arith.cmpi slt, %21, %c0_i32_10 : i32
    %29 = vector.broadcast %28 : i1 to vector<128x128xi1>
    %30 = vector.broadcast %29 : vector<128x128xi1> to vector<128x128xi1>
    %31 = arith.xori %27, %30 : vector<128x128xi1>
    %32 = arith.andi %31, %25 : vector<128x128xi1>
    %33 = vector.broadcast %21 : i32 to vector<128x128xi32>
    %34 = arith.addi %23, %33 : vector<128x128xi32>
    %35 = arith.select %32, %34, %23 : vector<128x128xi1>, vector<128x128xi32>
    %36 = arith.cmpi eq, %18, %35 : vector<128x128xi32>
    %cst = arith.constant 0.001953125 : f32
    %cst_11 = arith.constant 0.000000e+00 : f32
    %37 = vector.broadcast %cst : f32 to vector<128x128xf32>
    %38 = vector.broadcast %cst_11 : f32 to vector<128x128xf32>
    %39 = arith.select %36, %37, %38 : vector<128x128xi1>, vector<128x128xf32>
    %40 = tpu.iota {dimensions = array<i32: 0>} : vector<32x128xi32>
    %c16_i32 = arith.constant 16 : i32
    %c0_i32_12 = arith.constant 0 : i32
    %41 = arith.cmpi eq, %c16_i32, %c0_i32_12 : i32
    %c1_i32_13 = arith.constant 1 : i32
    %42 = arith.select %41, %c1_i32_13, %c16_i32 : i32
    %43 = vector.broadcast %42 : i32 to vector<32x128xi32>
    %44 = arith.remsi %40, %43 : vector<32x128xi32>
    %c0_i32_14 = arith.constant 0 : i32
    %45 = vector.broadcast %c0_i32_14 : i32 to vector<32x128xi32>
    %46 = arith.cmpi ne, %44, %45 : vector<32x128xi32>
    %c0_i32_15 = arith.constant 0 : i32
    %47 = vector.broadcast %c0_i32_15 : i32 to vector<32x128xi32>
    %48 = arith.cmpi slt, %44, %47 : vector<32x128xi32>
    %c0_i32_16 = arith.constant 0 : i32
    %49 = arith.cmpi slt, %42, %c0_i32_16 : i32
    %50 = vector.broadcast %49 : i1 to vector<32x128xi1>
    %51 = vector.broadcast %50 : vector<32x128xi1> to vector<32x128xi1>
    %52 = arith.xori %48, %51 : vector<32x128xi1>
    %53 = arith.andi %52, %46 : vector<32x128xi1>
    %54 = vector.broadcast %42 : i32 to vector<32x128xi32>
    %55 = arith.addi %44, %54 : vector<32x128xi32>
    %56 = arith.select %53, %55, %44 : vector<32x128xi1>, vector<32x128xi32>
    %c0_i32_17 = arith.constant 0 : i32
    %57 = vector.broadcast %c0_i32_17 : i32 to vector<32x128xi32>
    %58 = arith.cmpi eq, %56, %57 : vector<32x128xi32>
    %c16_i32_18 = arith.constant 16 : i32
    %c0_i32_19 = arith.constant 0 : i32
    %59 = arith.cmpi eq, %c16_i32_18, %c0_i32_19 : i32
    %c1_i32_20 = arith.constant 1 : i32
    %60 = arith.select %59, %c1_i32_20, %c16_i32_18 : i32
    %61 = vector.broadcast %60 : i32 to vector<32x128xi32>
    %62 = arith.remsi %40, %61 : vector<32x128xi32>
    %c0_i32_21 = arith.constant 0 : i32
    %63 = vector.broadcast %c0_i32_21 : i32 to vector<32x128xi32>
    %64 = arith.cmpi ne, %62, %63 : vector<32x128xi32>
    %c0_i32_22 = arith.constant 0 : i32
    %65 = vector.broadcast %c0_i32_22 : i32 to vector<32x128xi32>
    %66 = arith.cmpi slt, %62, %65 : vector<32x128xi32>
    %c0_i32_23 = arith.constant 0 : i32
    %67 = arith.cmpi slt, %60, %c0_i32_23 : i32
    %68 = vector.broadcast %67 : i1 to vector<32x128xi1>
    %69 = vector.broadcast %68 : vector<32x128xi1> to vector<32x128xi1>
    %70 = arith.xori %66, %69 : vector<32x128xi1>
    %71 = arith.andi %70, %64 : vector<32x128xi1>
    %72 = vector.broadcast %60 : i32 to vector<32x128xi32>
    %73 = arith.addi %62, %72 : vector<32x128xi32>
    %74 = arith.select %71, %73, %62 : vector<32x128xi1>, vector<32x128xi32>
    %c15_i32 = arith.constant 15 : i32
    %75 = vector.broadcast %c15_i32 : i32 to vector<32x128xi32>
    %76 = arith.cmpi eq, %74, %75 : vector<32x128xi32>
    %77 = arith.truncf %1 : vector<32x128xf32> to vector<32x128xbf16>
    %c0_24 = arith.constant 0 : index
    %c0_25 = arith.constant 0 : index
    %78 = vector.load %arg1[%c0_24, %c0_25] : memref<128x384xbf16, #tpu.memory_space<vmem>>, vector<128x384xbf16>
    %cst_26 = arith.constant dense<0.000000e+00> : vector<32x384xf32>
    %79 = tpu.matmul %77, %78, %cst_26 {dimension_numbers = #tpu.dot_dimension_numbers<[1], [0], [0], [1], [0, 0, 1, 1], [], []>} : vector<32x128xbf16>, vector<128x384xbf16>, vector<32x384xf32> -> vector<32x384xf32>
    %80 = vector.extract_strided_slice %79 {offsets = [0, 0], sizes = [32, 128], strides = [1, 1]} : vector<32x384xf32> to vector<32x128xf32>
    %c1_i32_27 = arith.constant 1 : i32
    %81 = tpu.dynamic_rotate %80 by %c1_i32_27 dim 0 : vector<32x128xf32>, i32 -> vector<32x128xf32>
    %cst_28 = arith.constant 0.000000e+00 : f32
    %82 = vector.broadcast %cst_28 : f32 to vector<32x128xf32>
    %83 = arith.select %58, %82, %81 : vector<32x128xi1>, vector<32x128xf32>
    %84 = vector.extract_strided_slice %79 {offsets = [0, 128], sizes = [32, 128], strides = [1, 1]} : vector<32x384xf32> to vector<32x128xf32>
    %85 = vector.extract_strided_slice %79 {offsets = [0, 256], sizes = [32, 128], strides = [1, 1]} : vector<32x384xf32> to vector<32x128xf32>
    %c31_i32 = arith.constant 31 : i32
    %86 = tpu.dynamic_rotate %85 by %c31_i32 dim 0 : vector<32x128xf32>, i32 -> vector<32x128xf32>
    %cst_29 = arith.constant 0.000000e+00 : f32
    %87 = vector.broadcast %cst_29 : f32 to vector<32x128xf32>
    %88 = arith.select %76, %87, %86 : vector<32x128xi1>, vector<32x128xf32>
    %89 = arith.addf %83, %84 : vector<32x128xf32>
    %90 = arith.addf %89, %88 : vector<32x128xf32>
    %c0_30 = arith.constant 0 : index
    %c0_31 = arith.constant 0 : index
    %91 = vector.load %arg2[%c0_30, %c0_31] : memref<1x128xf32, #tpu.memory_space<vmem>>, vector<1x128xf32>
    %92 = vector.broadcast %91 : vector<1x128xf32> to vector<32x128xf32>
    %93 = arith.addf %90, %92 : vector<32x128xf32>
    %cst_32 = arith.constant dense<0.000000e+00> : vector<128xf32>
    %94 = vector.multi_reduction <add>, %93, %cst_32 [0] : vector<32x128xf32> to vector<128xf32>
    %95 = vector.shape_cast %94 : vector<128xf32> to vector<1x128xf32>
    %96 = arith.mulf %93, %93 : vector<32x128xf32>
    %cst_33 = arith.constant dense<0.000000e+00> : vector<128xf32>
    %97 = vector.multi_reduction <add>, %96, %cst_33 [0] : vector<32x128xf32> to vector<128xf32>
    %98 = vector.shape_cast %97 : vector<128xf32> to vector<1x128xf32>
    %99 = tpu.concatenate %95, %98 in 0 : vector<1x128xf32>, vector<1x128xf32> -> vector<2x128xf32>
    %cst_34 = arith.constant dense<0.000000e+00> : vector<2x128xf32>
    %100 = tpu.matmul %99, %39, %cst_34 {dimension_numbers = #tpu.dot_dimension_numbers<[1], [0], [0], [1], [0, 0, 1, 1], [], []>} : vector<2x128xf32>, vector<128x128xf32>, vector<2x128xf32> -> vector<2x128xf32>
    %101 = vector.extract_strided_slice %100 {offsets = [0, 0], sizes = [1, 128], strides = [1, 1]} : vector<2x128xf32> to vector<1x128xf32>
    %102 = vector.extract_strided_slice %100 {offsets = [1, 0], sizes = [1, 128], strides = [1, 1]} : vector<2x128xf32> to vector<1x128xf32>
    %103 = arith.mulf %101, %101 : vector<1x128xf32>
    %104 = arith.subf %102, %103 : vector<1x128xf32>
    %c0_35 = arith.constant 0 : index
    %c0_36 = arith.constant 0 : index
    %105 = vector.load %arg3[%c0_35, %c0_36] : memref<1x128xf32, #tpu.memory_space<vmem>>, vector<1x128xf32>
    %cst_37 = arith.constant 9.99999974E-6 : f32
    %106 = vector.broadcast %cst_37 : f32 to vector<1x128xf32>
    %107 = arith.addf %104, %106 : vector<1x128xf32>
    %108 = math.rsqrt %107 : vector<1x128xf32>
    %109 = arith.mulf %105, %108 : vector<1x128xf32>
    %c0_38 = arith.constant 0 : index
    %c0_39 = arith.constant 0 : index
    %110 = vector.load %arg4[%c0_38, %c0_39] : memref<1x128xf32, #tpu.memory_space<vmem>>, vector<1x128xf32>
    %111 = arith.mulf %101, %109 : vector<1x128xf32>
    %112 = arith.subf %110, %111 : vector<1x128xf32>
    %113 = vector.broadcast %109 : vector<1x128xf32> to vector<32x128xf32>
    %114 = arith.mulf %93, %113 : vector<32x128xf32>
    %115 = vector.broadcast %112 : vector<1x128xf32> to vector<32x128xf32>
    %116 = arith.addf %114, %115 : vector<32x128xf32>
    %cst_40 = arith.constant 0.000000e+00 : f32
    %117 = vector.broadcast %cst_40 : f32 to vector<32x128xf32>
    %118 = arith.maximumf %116, %117 : vector<32x128xf32>
    %119 = arith.truncf %118 : vector<32x128xf32> to vector<32x128xbf16>
    %c0_41 = arith.constant 0 : index
    %c0_42 = arith.constant 0 : index
    %120 = vector.load %arg5[%c0_41, %c0_42] : memref<128x384xbf16, #tpu.memory_space<vmem>>, vector<128x384xbf16>
    %cst_43 = arith.constant dense<0.000000e+00> : vector<32x384xf32>
    %121 = tpu.matmul %119, %120, %cst_43 {dimension_numbers = #tpu.dot_dimension_numbers<[1], [0], [0], [1], [0, 0, 1, 1], [], []>} : vector<32x128xbf16>, vector<128x384xbf16>, vector<32x384xf32> -> vector<32x384xf32>
    %122 = vector.extract_strided_slice %121 {offsets = [0, 0], sizes = [32, 128], strides = [1, 1]} : vector<32x384xf32> to vector<32x128xf32>
    %c1_i32_44 = arith.constant 1 : i32
    %123 = tpu.dynamic_rotate %122 by %c1_i32_44 dim 0 : vector<32x128xf32>, i32 -> vector<32x128xf32>
    %cst_45 = arith.constant 0.000000e+00 : f32
    %124 = vector.broadcast %cst_45 : f32 to vector<32x128xf32>
    %125 = arith.select %58, %124, %123 : vector<32x128xi1>, vector<32x128xf32>
    %126 = vector.extract_strided_slice %121 {offsets = [0, 128], sizes = [32, 128], strides = [1, 1]} : vector<32x384xf32> to vector<32x128xf32>
    %127 = vector.extract_strided_slice %121 {offsets = [0, 256], sizes = [32, 128], strides = [1, 1]} : vector<32x384xf32> to vector<32x128xf32>
    %c31_i32_46 = arith.constant 31 : i32
    %128 = tpu.dynamic_rotate %127 by %c31_i32_46 dim 0 : vector<32x128xf32>, i32 -> vector<32x128xf32>
    %cst_47 = arith.constant 0.000000e+00 : f32
    %129 = vector.broadcast %cst_47 : f32 to vector<32x128xf32>
    %130 = arith.select %76, %129, %128 : vector<32x128xi1>, vector<32x128xf32>
    %131 = arith.addf %125, %126 : vector<32x128xf32>
    %132 = arith.addf %131, %130 : vector<32x128xf32>
    %c0_48 = arith.constant 0 : index
    %c0_49 = arith.constant 0 : index
    %133 = vector.load %arg6[%c0_48, %c0_49] : memref<1x128xf32, #tpu.memory_space<vmem>>, vector<1x128xf32>
    %134 = vector.broadcast %133 : vector<1x128xf32> to vector<32x128xf32>
    %135 = arith.addf %132, %134 : vector<32x128xf32>
    %cst_50 = arith.constant dense<0.000000e+00> : vector<128xf32>
    %136 = vector.multi_reduction <add>, %135, %cst_50 [0] : vector<32x128xf32> to vector<128xf32>
    %137 = vector.shape_cast %136 : vector<128xf32> to vector<1x128xf32>
    %138 = arith.mulf %135, %135 : vector<32x128xf32>
    %cst_51 = arith.constant dense<0.000000e+00> : vector<128xf32>
    %139 = vector.multi_reduction <add>, %138, %cst_51 [0] : vector<32x128xf32> to vector<128xf32>
    %140 = vector.shape_cast %139 : vector<128xf32> to vector<1x128xf32>
    %141 = tpu.concatenate %137, %140 in 0 : vector<1x128xf32>, vector<1x128xf32> -> vector<2x128xf32>
    %cst_52 = arith.constant dense<0.000000e+00> : vector<2x128xf32>
    %142 = tpu.matmul %141, %39, %cst_52 {dimension_numbers = #tpu.dot_dimension_numbers<[1], [0], [0], [1], [0, 0, 1, 1], [], []>} : vector<2x128xf32>, vector<128x128xf32>, vector<2x128xf32> -> vector<2x128xf32>
    %143 = vector.extract_strided_slice %142 {offsets = [0, 0], sizes = [1, 128], strides = [1, 1]} : vector<2x128xf32> to vector<1x128xf32>
    %144 = vector.extract_strided_slice %142 {offsets = [1, 0], sizes = [1, 128], strides = [1, 1]} : vector<2x128xf32> to vector<1x128xf32>
    %145 = arith.mulf %143, %143 : vector<1x128xf32>
    %146 = arith.subf %144, %145 : vector<1x128xf32>
    %c0_53 = arith.constant 0 : index
    %c0_54 = arith.constant 0 : index
    %147 = vector.load %arg7[%c0_53, %c0_54] : memref<1x128xf32, #tpu.memory_space<vmem>>, vector<1x128xf32>
    %cst_55 = arith.constant 9.99999974E-6 : f32
    %148 = vector.broadcast %cst_55 : f32 to vector<1x128xf32>
    %149 = arith.addf %146, %148 : vector<1x128xf32>
    %150 = math.rsqrt %149 : vector<1x128xf32>
    %151 = arith.mulf %147, %150 : vector<1x128xf32>
    %c0_56 = arith.constant 0 : index
    %c0_57 = arith.constant 0 : index
    %152 = vector.load %arg8[%c0_56, %c0_57] : memref<1x128xf32, #tpu.memory_space<vmem>>, vector<1x128xf32>
    %153 = arith.mulf %143, %151 : vector<1x128xf32>
    %154 = arith.subf %152, %153 : vector<1x128xf32>
    %155 = vector.broadcast %151 : vector<1x128xf32> to vector<32x128xf32>
    %156 = arith.mulf %135, %155 : vector<32x128xf32>
    %157 = vector.broadcast %154 : vector<1x128xf32> to vector<32x128xf32>
    %158 = arith.addf %156, %157 : vector<32x128xf32>
    %159 = arith.addf %158, %1 : vector<32x128xf32>
    %cst_58 = arith.constant 0.000000e+00 : f32
    %160 = vector.broadcast %cst_58 : f32 to vector<32x128xf32>
    %161 = arith.maximumf %159, %160 : vector<32x128xf32>
    %162 = vector.shape_cast %161 : vector<32x128xf32> to vector<2x16x128xf32>
    %c0_59 = arith.constant 0 : index
    %c0_60 = arith.constant 0 : index
    %c0_61 = arith.constant 0 : index
    %163 = vector.load %arg9[%c0_59, %c0_60, %c0_61] : memref<2x16x128xf32, #tpu.memory_space<vmem>>, vector<2x16x128xf32>
    tpu.vector_store %arg9[%c0_59, %c0_60, %c0_61], %162 {strides = array<i32>} : memref<2x16x128xf32, #tpu.memory_space<vmem>>, vector<2x16x128xf32>,
    return
  }
}

</mosaic_0001>

<bundles_post_ra>
// kernel: residual_block.1
= control target key start
LH: loop header
LB: loop body
LE: loop exit
PB: predicated region body
PF: predicated region fallthrough
CT: control target
= control target key end

     0   :  { %v1637_v1 = vmov 0   ;;  %v37_v31 = vlaneseq  ;;  %v1638_v42 = vmov 0.0|0.0   ;;  %v1639_v45 = vmov 0.001953125|0.001953125   ;;  %s2266_s1 = inlined_call_operand.vmem [shape: bf16[128,384], index: 1, kind: input, shape index: {}]   ;;  %s2267_s0 = inlined_call_operand.vmem [shape: f32[2,16,128], index: 0, kind: input, shape index: {}, may-alias: {0,9}]   ;;  %s2268_s2 = inlined_call_operand.vmem [shape: f32[1,128], index: 2, kind: input, shape index: {}]   ;;  %s2269_s5 = inlined_call_operand.vmem [shape: bf16[128,384], index: 5, kind: input, shape index: {}]   ;;  %s2270_s3 = inlined_call_operand.vmem [shape: f32[1,128], index: 3, kind: input, shape index: {}]   ;;  %s2271_s4 = inlined_call_operand.vmem [shape: f32[1,128], index: 4, kind: input, shape index: {}]   ;;  %s2272_s6 = inlined_call_operand.vmem [shape: f32[1,128], index: 6, kind: input, shape index: {}]   ;;  %s2273_s7 = inlined_call_operand.vmem [shape: f32[1,128], index: 7, kind: input, shape index: {}]   ;;  %s2274_s8 = inlined_call_operand.vmem [shape: f32[1,128], index: 8, kind: input, shape index: {}]   ;;  %s2275_s9 = inlined_call_operand.vmem [shape: f32[2,16,128], index: 9, kind: output, shape index: {}, may-alias: {0,9}]  }
   0x1   :  { %v1569_v0 = vld [vmem:[%s2266_s1 + $0x4] ss:$12 sps:$4 sm:$0xff]   ;;  %542 = vmatprep.mubr.bf16.mxu0 %v1637_v1  ;;  %v1571_v2 = vld [vmem:[%s2266_s1 + $0x8] ss:$12 sps:$4 sm:$0xff]   ;;  %v1572_v3 = vld [vmem:[%s2266_s1] ss:$12 sps:$4 sm:$0xff]  }
   0x2   :  { %510 = vmatprep.subr.bf16.mxu0 %v1569_v0  ;;  %1405 = vmatprep.subr.bf16.mxu1 %v1571_v2  ;;  %v1573_v4 = vld [vmem:[%s2266_s1 + $0x1c] ss:$12 sps:$4 sm:$0xff]   ;;  %v1575_v5 = vld [vmem:[%s2266_s1 + $0x20] ss:$12 sps:$4 sm:$0xff]   ;;  %v1576_v6 = vld [vmem:[%s2266_s1 + $0x18] ss:$12 sps:$4 sm:$0xff]  }
   0x3   :  { %511 = vmatpush1.bf16.msra.mxu0 %v1572_v3  ;;  %1406 = vmatpush3.bf16.msra.mxu1 %v1571_v2  ;;  %v1577_v7 = vld [vmem:[%s2266_s1 + $0x34] ss:$12 sps:$4 sm:$0xff]   ;;  %v1579_v8 = vld [vmem:[%s2266_s1 + $0x38] ss:$12 sps:$4 sm:$0xff]   ;;  %v1580_v9 = vld [vmem:[%s2266_s1 + $0x30] ss:$12 sps:$4 sm:$0xff]  }
   0x4   :  { %512 = vmatprep.subr.bf16.mxu0 %v1573_v4  ;;  %1407 = vmatprep.subr.bf16.mxu1 %v1575_v5  ;;  %v1581_v10 = vld [vmem:[%s2266_s1 + $0x4c] ss:$12 sps:$4 sm:$0xff]   ;;  %v1583_v11 = vld [vmem:[%s2266_s1 + $0x50] ss:$12 sps:$4 sm:$0xff]   ;;  %v1584_v12 = vld [vmem:[%s2266_s1 + $0x48] ss:$12 sps:$4 sm:$0xff]  }
   0x5   :  { %v1585_v13 = vld [vmem:[%s2266_s1 + $0x64] ss:$12 sps:$4 sm:$0xff]   ;;  %v1587_v14 = vld [vmem:[%s2266_s1 + $0x68] ss:$12 sps:$4 sm:$0xff]   ;;  %v1588_v15 = vld [vmem:[%s2266_s1 + $0x60] ss:$12 sps:$4 sm:$0xff]  }
   0x6   :  { %v1589_v16 = vld [vmem:[%s2266_s1 + $0x7c] ss:$12 sps:$4 sm:$0xff]   ;;  %v1591_v17 = vld [vmem:[%s2266_s1 + $0x80] ss:$12 sps:$4 sm:$0xff]   ;;  %v1592_v20 = vld [vmem:[%s2266_s1 + $0x78] ss:$12 sps:$4 sm:$0xff]  }
   0x7   :  { %513 = vmatpush1.bf16.msra.mxu0 %v1576_v6  ;;  %1408 = vmatpush3.bf16.msra.mxu1 %v1575_v5  ;;  %v1748_v18 = vld [vmem:[%s2267_s0] sm:$0xff]  ;;  %v1753_v19 = vld [vmem:[%s2267_s0 + $0x8] sm:$0xff]  ;;  %v1596_v24 = vld [vmem:[%s2266_s1 + $0x90] ss:$12 sps:$4 sm:$0xff]   ;;  %v1792_v32 = vshrl.u32 %v37_v31, 7  ;;  %v247_v34 = vand.u32 127, %v37_v31 }
   0x8   :  { %514 = vmatprep.subr.bf16.mxu0 %v1577_v7  ;;  %1409 = vmatprep.subr.bf16.mxu1 %v1579_v8  ;;  %v348_v21 = vpack.c.bf16 %v1753_v19, %v1748_v18  ;;  %v1593_v22 = vld [vmem:[%s2266_s1 + $0x94] ss:$12 sps:$4 sm:$0xff]   ;;  %v1595_v23 = vld [vmem:[%s2266_s1 + $0x98] ss:$12 sps:$4 sm:$0xff]   ;;  %v1599_v26 = vld [vmem:[%s2266_s1 + $0xb0] ss:$12 sps:$4 sm:$0xff]  }
   0x9   :  { %v1597_v25 = vld [vmem:[%s2266_s1 + $0xac] ss:$12 sps:$4 sm:$0xff]   ;;  %v1600_v27 = vld [vmem:[%s2266_s1 + $0xa8] ss:$12 sps:$4 sm:$0xff]   ;;  %v1795_v33 = vadd.s32 8, %v1792_v32  ;;  %v1798_v35 = vadd.s32 16, %v1792_v32 }
   0xa   :  { %1421 = vmatprep.mubr.bf16.mxu1 %v348_v21  ;;  %v1781_v28 = vld [vmem:[%s2267_s0 + $0x10] sm:$0xff]  ;;  %v1786_v29 = vld [vmem:[%s2267_s0 + $0x18] sm:$0xff]  ;;  %v58_v36 = vand.u32 7, %v1792_v32  ;;  %v1802_v38 = vand.u32 7, %v247_v34  ;;  %v1805_v39 = vadd.s32 24, %v1792_v32  ;;  %v42_v48 = vadd.s32 32, %v1792_v32 }
   0xb   :  { %515 = vmatpush1.bf16.msra.mxu0 %v1580_v9  ;;  %1410 = vmatpush3.bf16.msra.mxu1 %v1579_v8  ;;  %v349_v30 = vpack.c.bf16 %v1786_v29, %v1781_v28  ;;  %v65_v37 = vand.u32 7, %v1795_v33  ;;  %v72_v40 = vand.u32 7, %v1798_v35  ;;  %v43_v49 = vadd.s32 40, %v1792_v32 }
   0xc   :  { %516 = vmatprep.subr.bf16.mxu0 %v1581_v10  ;;  %1411 = vmatprep.subr.bf16.mxu1 %v1583_v11  ;;  %vm1809_vm0 = vcmp.eq.s32.totalorder %v58_v36, %v1802_v38  ;;  %v79_v44 = vand.u32 7, %v1805_v39  ;;  %v86_v50 = vand.u32 7, %v42_v48  ;;  %v44_v53 = vadd.s32 48, %v1792_v32 }
   0xd   :  { %vm1815_vm1 = vcmp.eq.s32.totalorder %v65_v37, %v1802_v38  ;;  %vm1832_vm3 = vcmp.eq.s32.totalorder %v72_v40, %v1802_v38  ;;  %v93_v51 = vand.u32 7, %v43_v49  ;;  %v45_v54 = vadd.s32 56, %v1792_v32 }
   0xe   :  { %vm2280_vm2 = vmpackc.low %vm1815_vm1, %vm1809_vm0  ;;  %vm1837_vm4 = vcmp.eq.s32.totalorder %v79_v44, %v1802_v38  ;;  %vm1855_vm6 = vcmp.eq.s32.totalorder %v86_v50, %v1802_v38  ;;  %v100_v56 = vand.u32 7, %v44_v53  ;;  %v46_v60 = vadd.s32 64, %v1792_v32 }
   0xf   :  { %517 = vmatpush1.bf16.msra.mxu0 %v1584_v12  ;;  %1412 = vmatpush3.bf16.msra.mxu1 %v1583_v11  ;;  %vm2279_vm5 = vmpackc.low %vm1837_vm4, %vm1832_vm3  ;;  %vm1862_vm7 = vcmp.eq.s32.totalorder %v93_v51, %v1802_v38  ;;  %v107_v57 = vand.u32 7, %v45_v54  ;;  %v47_v61 = vadd.s32 72, %v1792_v32  ;;  %v48_v3 = vadd.s32 80, %v1792_v32 }
  0x10   :  { %518 = vmatprep.subr.bf16.mxu0 %v1585_v13  ;;  %1413 = vmatprep.subr.bf16.mxu1 %v1587_v14  ;;  %vm2278_vm8 = vmpackc.low %vm1862_vm7, %vm1855_vm6  ;;  %vm1878_vm9 = vcmp.eq.s32.totalorder %v100_v56, %v1802_v38  ;;  %v114_v62 = vand.u32 7, %v46_v60  ;;  %v49_v4 = vadd.s32 88, %v1792_v32  ;;  %v2315_v7 = vmov 0 }
  0x11   :  { %vm1883_vm10 = vcmp.eq.s32.totalorder %v107_v57, %v1802_v38  ;;  %v121_v63 = vand.u32 7, %v47_v61  ;;  %v128_v5 = vand.u32 7, %v48_v3  ;;  %v2317_v8 = vmov 0 }
  0x12   :  { %vm2276_vm11 = vmpackc.low %vm1883_vm10, %vm1878_vm9  ;;  %vm1901_vm12 = vcmp.eq.s32.totalorder %v114_v62, %v1802_v38  ;;  %v135_v6 = vand.u32 7, %v49_v4  ;;  %v50_v9 = vadd.s32 96, %v1792_v32  ;;  %v51_v10 = vadd.s32 104, %v1792_v32 }
  0x13   :  { %519 = vmatpush1.bf16.msra.mxu0 %v1588_v15  ;;  %1414 = vmatpush3.bf16.msra.mxu1 %v1587_v14  ;;  %vm1906_vm13 = vcmp.eq.s32.totalorder %v121_v63, %v1802_v38  ;;  %vm1924_vm15 = vcmp.eq.s32.totalorder %v128_v5, %v1802_v38  ;;  %v52_v13 = vadd.s32 112, %v1792_v32  ;;  %v53_v14 = vadd.s32 120, %v1792_v32 }
  0x14   :  { %520 = vmatprep.subr.bf16.mxu0 %v1589_v16  ;;  %1415 = vmatprep.subr.bf16.mxu1 %v1591_v17  ;;  %vm2277_vm14 = vmpackc.low %vm1906_vm13, %vm1901_vm12  ;;  %v2316_v7 = vsel %vm1924_vm15, 4294967295, %v2315_v7  ;;  %v142_v11 = vand.u32 7, %v50_v9  ;;  %v149_v12 = vand.u32 7, %v51_v10  ;;  %v2319_v15 = vmov 0 }
  0x15   :  { %v2321_v16 = vmov 0  ;;  %v2327_v50 = vmov 0  ;;  %v310_v53 = vand.u32 15, %v1798_v35  ;;  %v296_v63 = vand.u32 15, %v1792_v32 }
  0x16   :  { %v317_v4 = vand.u32 15, %v1805_v39 }
  0x17   :  { %521 = vmatpush1.bf16.msra.mxu0 %v1592_v20  ;;  %1416 = vmatpush3.bf16.msra.mxu1 %v1591_v17  ;;  %v156_v17 = vand.u32 7, %v52_v13  ;;  %v163_v20 = vand.u32 7, %v53_v14 }
  0x18   :  { %522 = vmatprep.subr.bf16.mxu0 %v1593_v22  ;;  %1417 = vmatprep.subr.bf16.mxu1 %v1595_v23  ;;  %v2323_v22 = vmov 0 }
  0x1b   :  { %523 = vmatpush1.bf16.msra.mxu0 %v1596_v24  ;;  %1418 = vmatpush3.bf16.msra.mxu1 %v1595_v23  ;;  %v2325_v23 = vmov 0 }
  0x1c   :  { %524 = vmatprep.subr.bf16.mxu0 %v1597_v25  ;;  %1419 = vmatprep.subr.bf16.mxu1 %v1599_v26 }
  0x1f   :  { %525 = vmatpush1.bf16.msra.mxu0 %v1600_v27  ;;  %1420 = vmatpush3.bf16.msra.mxu1 %v1599_v26  ;;  %v303_v26 = vand.u32 15, %v1795_v33 }
  0x20   :  { %1515 = vmatprep.subr.bf16.mxu0 %v1638_v42 }
  0x22   :  { %543 = vmatmul.mubr.bf16.vlgmr.msra.gmra.mrb[0].mxu0 %v348_v21  ;;  %1422 = vmatmul.mubr.bf16.vlgmr.msra.gmra.mrb[0].mxu1 %v349_v30  ;;  %v1641_v21 = vmov 0.0  }
  0x23   :  { %552 = vmatprep.mubr.bf16.mxu0 %v1637_v1  ;;  %998 = vmatprep.mubr.bf16.mxu1 %v1637_v1 }
  0x24   :  { %1517 = vmatpush3.bf16.msk.msra.mxu0 %vm2280_vm2, %v1639_v45  ;;  %vm2284_vm2 = vmmov 0  }
  0x25   :  { %1518 = vmatprep.subr.bf16.mxu0 %v1638_v42 }
  0x28   :  { %1520 = vmatpush3.bf16.msk.msra.mxu0 %vm2279_vm5, %v1639_v45  ;;  %vm1954_vm5 = vcmp.eq.s32.totalorder %v149_v12, %v1802_v38 }
  0x29   :  { %1521 = vmatprep.subr.bf16.mxu0 %v1638_v42  ;;  %v2322_v16 = vsel %vm1954_vm5, 4294967295, %v2321_v16 }
  0x2a   :  { %553 = vmatmul.mubr.bf16.gmra.mrb[4].mxu0 %v349_v30 }
  0x2b   :  { %1457 = vmatprep.mubr.msk.f32.mxu0 %vm2284_vm2, %v1641_v21 }
  0x2c   :  { %1523 = vmatpush3.bf16.msk.msra.mxu0 %vm2278_vm8, %v1639_v45  ;;  %vm1949_vm8 = vcmp.eq.s32.totalorder %v142_v11, %v1802_v38 }
  0x2d   :  { %1524 = vmatprep.subr.bf16.mxu0 %v1638_v42  ;;  %v2320_v15 = vsel %vm1949_vm8, 4294967295, %v2319_v15 }
  0x30   :  { %1526 = vmatpush3.bf16.msk.msra.mxu0 %vm2276_vm11, %v1639_v45  ;;  %vm1929_vm11 = vcmp.eq.s32.totalorder %v135_v6, %v1802_v38 }
  0x31   :  { %1527 = vmatprep.subr.bf16.mxu0 %v1638_v42  ;;  %v2318_v8 = vsel %vm1929_vm11, 4294967295, %v2317_v8 }
  0x34   :  { %1529 = vmatpush3.bf16.msk.msra.mxu0 %vm2277_vm14, %v1639_v45  ;;  %vm2281_vm14 = vmpackc.low %vm1929_vm11, %vm1924_vm15  ;;  %vm1965_vm15 = vcmp.eq.s32.totalorder %v156_v17, %v1802_v38  ;;  %vm1970_vm11 = vcmp.eq.s32.totalorder %v163_v20, %v1802_v38 }
  0x35   :  { %1530 = vmatprep.subr.bf16.mxu0 %v1638_v42  ;;  %v2324_v22 = vsel %vm1965_vm15, 4294967295, %v2323_v22  ;;  %v2326_v23 = vsel %vm1970_vm11, 4294967295, %v2325_v23  ;;  %vm2287_vm2 = vmpackc.low %vm1970_vm11, %vm1965_vm15  ;;  %vm2290_vm15 = vcmp.lt.s32.totalorder %v1792_v32, 7  ;;  %vm2331_vm11 = vcmp.lt.s32.totalorder %v1792_v32, 1 }
  0x38   :  { %1532 = vmatpush3.bf16.msk.msra.mxu0 %vm2281_vm14, %v1639_v45  ;;  %vm2285_vm14 = vmpackc.low %vm1954_vm5, %vm1949_vm8 }
  0x39   :  { %1533 = vmatprep.subr.bf16.mxu0 %v1638_v42  ;;  %vm2336_vm8 = vmmov %vm2331_vm11 }
  0x3a   :  { %vm2337_vm5 = vmmov %vm2336_vm8 }
  0x3c   :  { %1535 = vmatpush3.bf16.msk.msra.mxu0 %vm2285_vm14, %v1639_v45  ;;  %vm2288_vm14 = vcmp.lt.s32.totalorder %v1792_v32, 1 }
  0x3d   :  { %1536 = vmatprep.subr.bf16.mxu0 %v1638_v42 }
  0x40   :  { %1538 = vmatpush3.bf16.msk.msra.mxu0 %vm2287_vm2, %v1639_v45  ;;  %vm1994_vm2 = vcmp.eq.s32.totalorder %v303_v26, 15  ;;  %v1293_v26 = vld [vmem:[%s2268_s2] ss:$0 sm:$0xff] }
  0x41   :  { %v2328_v50 = vsel %vm1994_vm2, 4294967295, %v2327_v50 }
  0xf5   :  { %v544_v24 = vpop.f32.mrb[0].mxu0  ;;  %v1423_v25 = vpop.f32.mrb[0].mxu1 }
  0xf6   :  { %v546_v27 = vpop.f32.mrb[1].mxu0  ;;  %v597_v30 = vpop.f32.mrb[1].mxu1  ;;  %v627_v31 = vrot.slane %v1423_v25, 1  ;;  %v612_v38 = vrot.slane %v544_v24, 7 }
  0xf7   :  { %v625_v34 = vrot.slane %v597_v30, 1  ;;  %v548_v36 = vpop.f32.mrb[2].mxu0  ;;  %v1424_v37 = vpop.f32.mrb[2].mxu1 }
  0xf8   :  { %v613_v40 = vrot.slane %v548_v36, 7  ;;  %v628_v44 = vrot.slane %v1424_v37, 1  ;;  %v550_v48 = vpop.f32.mrb[3].mxu0  ;;  %v600_v49 = vpop.f32.mrb[3].mxu1 }
  0xf9   :  { %v626_v33 = vrot.slane %v600_v49, 1 }
  0xfa   :  { %v619_v51 = vsel %vm2288_vm14, %v612_v38, %v613_v40  ;;  %v630_v54 = vsel %vm2290_vm15, %v627_v31, %v628_v44  ;;  %v633_v56 = vsel %vm2290_vm15, %v628_v44, %v625_v34  ;;  %vm2013_vm14 = vcmp.eq.s32.totalorder %v310_v53, 0 }
  0xfb   :  { %v639_v57 = vadd.f32 %v619_v51, %v550_v48  ;;  %v631_v60 = vsel %vm2290_vm15, %v626_v33, %v627_v31  ;;  %v632_v61 = vsel %vm2290_vm15, %v625_v34, %v626_v33  ;;  %vm2019_vm15 = vcmp.eq.s32.totalorder %v296_v63, 0 }
  0xfc   :  { %v635_v62 = vsel %vm1994_vm2, 0.0, %v631_v60  ;;  %vm2025_vm2 = vcmp.eq.s32.totalorder %v317_v4, 15 }
  0xfd   :  { %v643_v3 = vadd.f32 %v639_v57, %v635_v62  ;;  %v554_v35 = vpop.f32.mrb[4].mxu0  ;;  %v637_v37 = vsel %vm2025_vm2, 0.0, %v633_v56 }
  0xfe   :  { %v614_v5 = vrot.slane %v554_v35, 7  ;;  %v556_v9 = vpop.f32.mrb[5].mxu0 }
  0xff   :  { %v558_v10 = vpop.f32.mrb[6].mxu0  ;;  %v2040_v44 = vadd.f32 %v1293_v26, %v643_v3 }
 0x100   :  { %v618_v11 = vsel %vm2331_vm11, %v613_v40, %v614_v5  ;;  %v615_v13 = vrot.slane %v558_v10, 7  ;;  %v560_v14 = vpop.f32.mrb[7].mxu0  ;;  %vm2339_vm11 = vmpackc.low %vm1837_vm4, %vm1832_vm3  ;;  %vm2344_vm4 = vnez %v2318_v8 }
 0x101   :  { %v623_v17 = vsel %vm2013_vm14, 0.0, %v618_v11  ;;  %vm2343_vm3 = vmpackc.low %vm1906_vm13, %vm1901_vm12  ;;  %vm2350_vm12 = vnez %v2326_v23  ;;  %vm2351_vm13 = vnez %v2324_v22 }
 0x102   :  { %v640_v20 = vadd.f32 %v623_v17, %v556_v9  ;;  %v620_v24 = vsel %vm2336_vm8, %v615_v13, %v612_v38  ;;  %v617_v25 = vsel %vm2337_vm5, %v614_v5, %v615_v13  ;;  %vm2294_vm5 = vcmask 1040384   ;;  %vm2338_vm8 = vmpackc.low %vm1815_vm1, %vm1809_vm0 }
 0x103   :  { %v621_v30 = vsel %vm2019_vm15, 0.0, %v620_v24  ;;  %v641_v31 = vadd.f32 %v617_v25, %v560_v14  ;;  %vm2341_vm0 = vmpackc.low %vm1862_vm7, %vm1855_vm6  ;;  %vm2345_vm6 = vnez %v2316_v7 }
 0x104   :  { %v644_v34 = vadd.f32 %v640_v20, %v630_v54  ;;  %v638_v36 = vadd.f32 %v621_v30, %v546_v27  ;;  %v667_v27 = vmul.f32 %v2040_v44, %v2040_v44  ;;  %v1601_v30 = vld [vmem:[%s2269_s5] ss:$12 sps:$4 sm:$0xff]   ;;  %vm2342_vm1 = vmpackc.low %vm1883_vm10, %vm1878_vm9  ;;  %vm2347_vm9 = vnez %v2322_v16 }
 0x105   :  { %v645_v40 = vadd.f32 %v641_v31, %v637_v37  ;;  %v1604_v31 = vld [vmem:[%s2269_s5 + $0x8] ss:$12 sps:$4 sm:$0xff]   ;;  %v1608_v37 = vld [vmem:[%s2269_s5 + $0x20] ss:$12 sps:$4 sm:$0xff]   ;;  %vm2346_vm7 = vmpackc.low %vm2344_vm4, %vm2345_vm6  ;;  %vm2348_vm10 = vnez %v2320_v15  ;;  %vm2358_vm6 = vnez %v2328_v50 }
 0x106   :  { %v642_v38 = vadd.f32 %v638_v36, %v632_v61  ;;  %v2042_v48 = vadd.f32 %v1293_v26, %v644_v34  ;;  %1460 = vmatprep.subr.bf16.mxu0 %v1604_v31  ;;  %v1607_v34 = vld [vmem:[%s2269_s5 + $0x1c] ss:$12 sps:$4 sm:$0xff]   ;;  %v1605_v36 = vld [vmem:[%s2269_s5 + $0x18] ss:$12 sps:$4 sm:$0xff]  }
 0x107   :  { %v2048_v51 = vadd.f32 %v1293_v26, %v645_v40  ;;  %v1611_v40 = vld [vmem:[%s2269_s5 + $0x34] ss:$12 sps:$4 sm:$0xff]  }
 0x108   :  { %v2044_v49 = vadd.f32 %v1293_v26, %v642_v38  ;;  %v668_v54 = vmul.f32 %v2042_v48, %v2042_v48  ;;  %v1603_v26 = vld [vmem:[%s2269_s5 + $0x4] ss:$12 sps:$4 sm:$0xff]  }
 0x109   :  { %v669_v61 = vmul.f32 %v2048_v51, %v2048_v51  ;;  %966 = vmatprep.subr.bf16.mxu1 %v1603_v26  ;;  %v1609_v38 = vld [vmem:[%s2269_s5 + $0x30] ss:$12 sps:$4 sm:$0xff]  }
 0x10a   :  { %v666_v33 = vmul.f32 %v2044_v49, %v2044_v49  ;;  %v657_v53 = vadd.f32 %v2040_v44, %v2044_v49  ;;  %967 = vmatpush1.bf16.msra.mxu1 %v1601_v30 }
 0x10b   :  { %968 = vmatprep.subr.bf16.mxu1 %v1607_v34 }
 0x10c   :  { %v658_v56 = vadd.f32 %v657_v53, %v2042_v48  ;;  %v670_v57 = vadd.f32 %v667_v27, %v666_v33  ;;  %v1612_v33 = vld [vmem:[%s2269_s5 + $0x38] ss:$12 sps:$4 sm:$0xff]   ;;  %v1613_v27 = vld [vmem:[%s2269_s5 + $0x48] ss:$12 sps:$4 sm:$0xff]  }
 0x10d   :  { %v1615_v53 = vld [vmem:[%s2269_s5 + $0x4c] ss:$12 sps:$4 sm:$0xff]  }
 0x10e   :  { %v659_v60 = vadd.f32 %v658_v56, %v2048_v51  ;;  %v671_v62 = vadd.f32 %v670_v57, %v668_v54  ;;  %969 = vmatpush1.bf16.msra.mxu1 %v1605_v36  ;;  %v1616_v54 = vld [vmem:[%s2269_s5 + $0x50] ss:$12 sps:$4 sm:$0xff]   ;;  %v1617_v57 = vld [vmem:[%s2269_s5 + $0x60] ss:$12 sps:$4 sm:$0xff]  }
 0x10f   :  { %970 = vmatprep.subr.bf16.mxu1 %v1611_v40  ;;  %v1619_v56 = vld [vmem:[%s2269_s5 + $0x64] ss:$12 sps:$4 sm:$0xff]   ;;  %v756_v40 = vld [vmem:[%s2270_s3] sm:$0x1] }
 0x110   :  { %v660_v63 = vrot.slane %v659_v60, 4  ;;  %v672_v3 = vadd.f32 %v671_v62, %v669_v61  ;;  %v1623_v61 = vld [vmem:[%s2269_s5 + $0x7c] ss:$12 sps:$4 sm:$0xff]   ;;  %v1621_v62 = vld [vmem:[%s2269_s5 + $0x78] ss:$12 sps:$4 sm:$0xff]  }
 0x112   :  { %v661_v35 = vadd.f32 %v660_v63, %v659_v60  ;;  %v673_v4 = vrot.slane %v672_v3, 4  ;;  %971 = vmatpush1.bf16.msra.mxu1 %v1609_v38  ;;  %v1620_v60 = vld [vmem:[%s2269_s5 + $0x68] ss:$12 sps:$4 sm:$0xff]   ;;  %v1624_v63 = vld [vmem:[%s2269_s5 + $0x80] ss:$12 sps:$4 sm:$0xff]  }
 0x113   :  { %972 = vmatprep.subr.bf16.mxu1 %v1615_v53 }
 0x114   :  { %v662_v5 = vrot.slane %v661_v35, 2  ;;  %v674_v9 = vadd.f32 %v673_v4, %v672_v3  ;;  %v1627_v3 = vld [vmem:[%s2269_s5 + $0x94] ss:$12 sps:$4 sm:$0xff]   ;;  %v1628_v4 = vld [vmem:[%s2269_s5 + $0x98] ss:$12 sps:$4 sm:$0xff]  }
 0x116   :  { %v663_v10 = vadd.f32 %v662_v5, %v661_v35  ;;  %v675_v11 = vrot.slane %v674_v9, 2  ;;  %973 = vmatpush1.bf16.msra.mxu1 %v1613_v27  ;;  %v1625_v35 = vld [vmem:[%s2269_s5 + $0x90] ss:$12 sps:$4 sm:$0xff]   ;;  %v1631_v5 = vld [vmem:[%s2269_s5 + $0xac] ss:$12 sps:$4 sm:$0xff]  }
 0x117   :  { %974 = vmatprep.subr.bf16.mxu1 %v1619_v56  ;;  %v777_v27 = vld [vmem:[%s2271_s4] sm:$0x1] }
 0x118   :  { %v664_v13 = vrot.slane %v663_v10, 1  ;;  %v676_v14 = vadd.f32 %v675_v11, %v674_v9  ;;  %v1632_v9 = vld [vmem:[%s2269_s5 + $0xb0] ss:$12 sps:$4 sm:$0xff]  }
 0x11a   :  { %v677_v17 = vrot.slane %v676_v14, 1  ;;  %v665_v20 = vadd.f32 %v664_v13, %v663_v10  ;;  %975 = vmatpush1.bf16.msra.mxu1 %v1617_v57  ;;  %v1629_v10 = vld [vmem:[%s2269_s5 + $0xa8] ss:$12 sps:$4 sm:$0xff]  }
 0x11b   :  { %976 = vmatprep.subr.bf16.mxu1 %v1623_v61 }
 0x11c   :  { %v678_v24 = vadd.f32 %v677_v17, %v676_v14 }
 0x11e   :  { %v680_v25 = vsel %vm2294_vm5, %v665_v20, %v678_v24  ;;  %977 = vmatpush1.bf16.msra.mxu1 %v1621_v62  ;;  %vm2340_vm5 = vmmov 0  }
 0x11f   :  { %1458 = vmatmul.mubr.f32.vlgmr.msra.gmra.mrb[8].mxu0 %v680_v25  ;;  %978 = vmatprep.subr.bf16.mxu1 %v1627_v3  ;;  %v1642_v25 = vmov 1966171168  }
 0x120   :  { %1461 = vmatpush3.bf16.msra.mxu0 %v1604_v31  ;;  %v761_v26 = vunpack.c.l.s4 %v1642_v25 }
 0x121   :  { %1462 = vmatprep.subr.bf16.mxu0 %v1608_v37 }
 0x122   :  { %979 = vmatpush1.bf16.msra.mxu1 %v1625_v35  ;;  %v762_v30 = vunpack.c.0.s8 %v761_v26 }
 0x123   :  { %980 = vmatprep.subr.bf16.mxu1 %v1631_v5 }
 0x124   :  { %1463 = vmatpush3.bf16.msra.mxu0 %v1608_v37  ;;  %v2135_v31 = vsub.s32 %v762_v30, %v1792_v32 }
 0x125   :  { %1464 = vmatprep.subr.bf16.mxu0 %v1612_v33 }
 0x126   :  { %981 = vmatpush1.bf16.msra.mxu1 %v1629_v10 }
 0x127   :  { %1539 = vmatprep.subr.bf16.mxu1 %v1638_v42 }
 0x128   :  { %1465 = vmatpush3.bf16.msra.mxu0 %v1612_v33  ;;  %v2143_v33 = vsub.s32 0, %v1792_v32 }
 0x129   :  { %1466 = vmatprep.subr.bf16.mxu0 %v1616_v54 }
 0x12c   :  { %1467 = vmatpush3.bf16.msra.mxu0 %v1616_v54 }
 0x12d   :  { %1468 = vmatprep.subr.bf16.mxu0 %v1620_v60 }
 0x130   :  { %1469 = vmatpush3.bf16.msra.mxu0 %v1620_v60 }
 0x131   :  { %1470 = vmatprep.subr.bf16.mxu0 %v1624_v63 }
 0x134   :  { %1471 = vmatpush3.bf16.msra.mxu0 %v1624_v63 }
 0x135   :  { %1472 = vmatprep.subr.bf16.mxu0 %v1628_v4 }
 0x138   :  { %1473 = vmatpush3.bf16.msra.mxu0 %v1628_v4 }
 0x139   :  { %1474 = vmatprep.subr.bf16.mxu0 %v1632_v9 }
 0x13c   :  { %1475 = vmatpush3.bf16.msra.mxu0 %v1632_v9 }
 0x1f2   :  { %v747_v11 = vpop.f32.mrb[8].mxu0 }
 0x1f3   :  { %v751_v13 = vmul.f32 %v747_v11, %v747_v11  ;;  %v1459_v14 = vpop.f32.mrb[9].mxu0 }
 0x1f5   :  { %v753_v17 = vrot.slane %v751_v13, 7 }
 0x1f7   :  { %v755_v20 = vsub.f32 %v747_v11, %v753_v17 }
 0x1f9   :  { %v757_v24 = vadd.f32 1e-05, %v755_v20 }
 0x1fb   :  { %1633 = vrsqrt.f32 %v757_v24 }
 0x205   :  { %v1634_v34 = vpop.eup %1633 }
 0x206   :  { %v766_v36 = vrot.slane %v1634_v34, %v2135_v31 }
 0x208   :  { %v767_v37 = vcombine.high %v766_v36, %v766_v36 }
 0x20a   :  { %v774_v38 = vrot.slane %v767_v37, %v2135_v31 }
 0x20c   :  { %v776_v53 = vmul.f32 %v774_v38, %v756_v40  ;;  %v1334_v38 = vld [vmem:[%s2272_s6] ss:$0 sm:$0xff] }
 0x20e   :  { %v778_v54 = vmul.f32 %v776_v53, %v747_v11  ;;  %v784_v56 = vrot.slane %v776_v53, %v2143_v33 }
 0x210   :  { %v779_v57 = vsub.f32 %v777_v27, %v778_v54  ;;  %v786_v60 = vmul.f32 %v784_v56, %v2044_v49  ;;  %v787_v62 = vmul.f32 %v784_v56, %v2040_v44  ;;  %v788_v63 = vmul.f32 %v784_v56, %v2042_v48 }
 0x211   :  { %v789_v3 = vmul.f32 %v784_v56, %v2048_v51 }
 0x212   :  { %v794_v61 = vrot.slane %v779_v57, %v2143_v33 }
 0x214   :  { %v796_v35 = vadd.f32 %v794_v61, %v786_v60  ;;  %v797_v4 = vadd.f32 %v794_v61, %v787_v62  ;;  %v798_v5 = vadd.f32 %v794_v61, %v788_v63  ;;  %v799_v9 = vadd.f32 %v794_v61, %v789_v3 }
 0x216   :  { %v800_v10 = vmax.f32 %v796_v35, 0.0  ;;  %v801_v13 = vmax.f32 %v797_v4, 0.0  ;;  %v802_v11 = vmax.f32 %v798_v5, 0.0  ;;  %v803_v14 = vmax.f32 %v799_v9, 0.0 }
 0x218   :  { %v804_v17 = vpack.c.bf16 %v801_v13, %v800_v10  ;;  %v805_v20 = vpack.c.bf16 %v803_v14, %v802_v11 }
 0x21a   :  { %999 = vmatmul.mubr.bf16.vlgmr.msra.gmra.mrb[4].mxu1 %v804_v17  ;;  %1476 = vmatprep.mubr.bf16.mxu0 %v804_v17 }
 0x21b   :  { %1477 = vmatmul.mubr.bf16.vlgmr.msra.gmra.mrb[12].mxu0 %v805_v20  ;;  %1008 = vmatprep.mubr.bf16.mxu1 %v1637_v1 }
 0x21c   :  { %1541 = vmatpush3.bf16.msk.msra.mxu1 %vm2338_vm8, %v1639_v45  ;;  %vm2352_vm8 = vmpackc.low %vm2350_vm12, %vm2351_vm13 }
 0x21d   :  { %1542 = vmatprep.subr.bf16.mxu1 %v1638_v42 }
 0x220   :  { %1544 = vmatpush3.bf16.msk.msra.mxu1 %vm2339_vm11, %v1639_v45  ;;  %vm2353_vm11 = vcmp.lt.s32.totalorder %v1792_v32, 1 }
 0x221   :  { %1545 = vmatprep.subr.bf16.mxu1 %v1638_v42 }
 0x222   :  { %1009 = vmatmul.mubr.bf16.gmra.mrb[8].mxu1 %v805_v20 }
 0x223   :  { %1512 = vmatprep.mubr.msk.f32.mxu1 %vm2340_vm5, %v1641_v21  ;;  %vm2349_vm5 = vmpackc.low %vm2347_vm9, %vm2348_vm10 }
 0x224   :  { %1547 = vmatpush3.bf16.msk.msra.mxu1 %vm2341_vm0, %v1639_v45  ;;  %vm2354_vm0 = vcmp.lt.s32.totalorder %v1792_v32, 7 }
 0x225   :  { %1548 = vmatprep.subr.bf16.mxu1 %v1638_v42  ;;  %vm2357_vm4 = vmmov %vm2354_vm0 }
 0x228   :  { %1550 = vmatpush3.bf16.msk.msra.mxu1 %vm2342_vm1, %v1639_v45  ;;  %vm2355_vm1 = vmmov %vm2354_vm0 }
 0x229   :  { %1551 = vmatprep.subr.bf16.mxu1 %v1638_v42 }
 0x22c   :  { %1553 = vmatpush3.bf16.msk.msra.mxu1 %vm2343_vm3, %v1639_v45  ;;  %vm2356_vm3 = vmmov %vm2354_vm0 }
 0x22d   :  { %1554 = vmatprep.subr.bf16.mxu1 %v1638_v42 }
 0x230   :  { %1556 = vmatpush3.bf16.msk.msra.mxu1 %vm2346_vm7, %v1639_v45  ;;  %vm2359_vm7 = vmmov %vm2353_vm11 }
 0x231   :  { %1557 = vmatprep.subr.bf16.mxu1 %v1638_v42  ;;  %vm2360_vm9 = vmmov %vm2359_vm7 }
 0x232   :  { %vm2361_vm10 = vmmov %vm2359_vm7 }
 0x234   :  { %1559 = vmatpush3.bf16.msk.msra.mxu1 %vm2349_vm5, %v1639_v45 }
 0x235   :  { %1560 = vmatprep.subr.bf16.mxu1 %v1638_v42 }
 0x238   :  { %1562 = vmatpush3.bf16.msk.msra.mxu1 %vm2352_vm8, %v1639_v45 }
 0x2ed   :  { %v1000_v1 = vpop.f32.mrb[4].mxu1 }
 0x2ee   :  { %v1002_v41 = vpop.f32.mrb[5].mxu1  ;;  %v1478_v43 = vpop.f32.mrb[12].mxu0  ;;  %v1068_v52 = vrot.slane %v1000_v1, 7 }
 0x2ef   :  { %v1004_v46 = vpop.f32.mrb[6].mxu1  ;;  %v1053_v47 = vpop.f32.mrb[13].mxu0  ;;  %v1082_v2 = vrot.slane %v1478_v43, 1 }
 0x2f0   :  { %v1069_v55 = vrot.slane %v1004_v46, 7  ;;  %v1080_v58 = vrot.slane %v1053_v47, 1  ;;  %v1006_v59 = vpop.f32.mrb[7].mxu1  ;;  %v1479_v0 = vpop.f32.mrb[14].mxu0 }
 0x2f1   :  { %v1083_v7 = vrot.slane %v1479_v0, 1  ;;  %v1056_v42 = vpop.f32.mrb[15].mxu0 }
 0x2f2   :  { %v1074_v8 = vsel %vm2353_vm11, %v1068_v52, %v1069_v55  ;;  %v1081_v15 = vrot.slane %v1056_v42, 1 }
 0x2f3   :  { %v1093_v16 = vadd.f32 %v1074_v8, %v1006_v59  ;;  %v1084_v45 = vsel %vm2354_vm0, %v1082_v2, %v1083_v7  ;;  %v1087_v21 = vsel %vm2355_vm1, %v1083_v7, %v1080_v58 }
 0x2f4   :  { %v1085_v22 = vsel %vm2356_vm3, %v1081_v15, %v1082_v2  ;;  %v1086_v23 = vsel %vm2357_vm4, %v1080_v58, %v1081_v15  ;;  %v1091_v6 = vsel %vm2025_vm2, 0.0, %v1087_v21  ;;  %vm2362_vm2 = vcmask 1040384  }
 0x2f5   :  { %v1089_v44 = vsel %vm2358_vm6, 0.0, %v1085_v22  ;;  %v1010_v48 = vpop.f32.mrb[8].mxu1 }
 0x2f6   :  { %v1097_v49 = vadd.f32 %v1093_v16, %v1089_v44  ;;  %v1070_v51 = vrot.slane %v1010_v48, 7  ;;  %v1012_v24 = vpop.f32.mrb[9].mxu1 }
 0x2f7   :  { %v1014_v25 = vpop.f32.mrb[10].mxu1 }
 0x2f8   :  { %v1073_v26 = vsel %vm2359_vm7, %v1069_v55, %v1070_v51  ;;  %v1071_v30 = vrot.slane %v1014_v25, 7  ;;  %v1016_v34 = vpop.f32.mrb[11].mxu1  ;;  %v1108_v60 = vadd.f32 %v1334_v38, %v1097_v49  ;;  %v1230_v49 = vld [vmem:[%s2274_s8] sm:$0x1] }
 0x2f9   :  { %v1078_v36 = vsel %vm2013_vm14, 0.0, %v1073_v26 }
 0x2fa   :  { %v1094_v37 = vadd.f32 %v1078_v36, %v1012_v24  ;;  %v1075_v40 = vsel %vm2360_vm9, %v1071_v30, %v1068_v52  ;;  %v1072_v50 = vsel %vm2361_vm10, %v1070_v51, %v1071_v30  ;;  %v1121_v32 = vmul.f32 %v1108_v60, %v1108_v60 }
 0x2fb   :  { %v1076_v53 = vsel %vm2019_vm15, 0.0, %v1075_v40  ;;  %v1095_v27 = vadd.f32 %v1072_v50, %v1016_v34 }
 0x2fc   :  { %v1098_v54 = vadd.f32 %v1094_v37, %v1084_v45  ;;  %v1092_v56 = vadd.f32 %v1076_v53, %v1002_v41 }
 0x2fd   :  { %v1099_v57 = vadd.f32 %v1095_v27, %v1091_v6 }
 0x2fe   :  { %v1096_v61 = vadd.f32 %v1092_v56, %v1086_v23  ;;  %v1109_v62 = vadd.f32 %v1334_v38, %v1098_v54  ;;  %v1209_v23 = vld [vmem:[%s2273_s7] sm:$0x1] }
 0x2ff   :  { %v1110_v35 = vadd.f32 %v1334_v38, %v1099_v57 }
 0x300   :  { %v1107_v63 = vadd.f32 %v1334_v38, %v1096_v61  ;;  %v1122_v5 = vmul.f32 %v1109_v62, %v1109_v62 }
 0x301   :  { %v1123_v13 = vmul.f32 %v1110_v35, %v1110_v35 }
 0x302   :  { %v1120_v3 = vmul.f32 %v1107_v63, %v1107_v63  ;;  %v1111_v4 = vadd.f32 %v1108_v60, %v1107_v63 }
 0x304   :  { %v1112_v9 = vadd.f32 %v1111_v4, %v1109_v62  ;;  %v1124_v10 = vadd.f32 %v1121_v32, %v1120_v3 }
 0x306   :  { %v1113_v12 = vadd.f32 %v1112_v9, %v1110_v35  ;;  %v1125_v11 = vadd.f32 %v1124_v10, %v1122_v5 }
 0x308   :  { %v1114_v14 = vrot.slane %v1113_v12, 4  ;;  %v1126_v17 = vadd.f32 %v1125_v11, %v1123_v13 }
 0x30a   :  { %v1115_v20 = vadd.f32 %v1114_v14, %v1113_v12  ;;  %v1127_v39 = vrot.slane %v1126_v17, 4 }
 0x30c   :  { %v1116_v1 = vrot.slane %v1115_v20, 2  ;;  %v1128_v41 = vadd.f32 %v1127_v39, %v1126_v17 }
 0x30e   :  { %v1117_v43 = vadd.f32 %v1116_v1, %v1115_v20  ;;  %v1129_v46 = vrot.slane %v1128_v41, 2 }
 0x310   :  { %v1118_v47 = vrot.slane %v1117_v43, 1  ;;  %v1130_v52 = vadd.f32 %v1129_v46, %v1128_v41 }
 0x312   :  { %v1131_v55 = vrot.slane %v1130_v52, 1  ;;  %v1119_v58 = vadd.f32 %v1118_v47, %v1117_v43 }
 0x314   :  { %v1132_v59 = vadd.f32 %v1131_v55, %v1130_v52 }
 0x316   :  { %v1133_v0 = vsel %vm2362_vm2, %v1119_v58, %v1132_v59 }
 0x317   :  { %1513 = vmatmul.mubr.f32.vlgmr.msra.gmra.mrb[12].mxu1 %v1133_v0 }
 0x3ea   :  { %v1200_v2 = vpop.f32.mrb[12].mxu1 }
 0x3eb   :  { %v1204_v7 = vmul.f32 %v1200_v2, %v1200_v2  ;;  %v1514_v42 = vpop.f32.mrb[13].mxu1 }
 0x3ed   :  { %v1206_v8 = vrot.slane %v1204_v7, 7 }
 0x3ef   :  { %v1208_v15 = vsub.f32 %v1200_v2, %v1206_v8 }
 0x3f1   :  { %v1210_v16 = vadd.f32 1e-05, %v1208_v15 }
 0x3f3   :  { %1635 = vrsqrt.f32 %v1210_v16 }
 0x3fd   :  { %v1636_v45 = vpop.eup %1635 }
 0x3fe   :  { %v1219_v21 = vrot.slane %v1636_v45, %v2135_v31 }
 0x400   :  { %v1220_v22 = vcombine.high %v1219_v21, %v1219_v21 }
 0x402   :  { %v1227_v44 = vrot.slane %v1220_v22, %v2135_v31 }
 0x404   :  { %v1229_v48 = vmul.f32 %v1227_v44, %v1209_v23 }
 0x406   :  { %v1231_v51 = vmul.f32 %v1229_v48, %v1200_v2  ;;  %v1237_v24 = vrot.slane %v1229_v48, %v2143_v33 }
 0x408   :  { %v1232_v25 = vsub.f32 %v1230_v49, %v1231_v51  ;;  %v1239_v26 = vmul.f32 %v1237_v24, %v1107_v63  ;;  %v1240_v30 = vmul.f32 %v1237_v24, %v1108_v60  ;;  %v1241_v34 = vmul.f32 %v1237_v24, %v1109_v62 }
 0x409   :  { %v1242_v36 = vmul.f32 %v1237_v24, %v1110_v35 }
 0x40a   :  { %v1247_v37 = vrot.slane %v1232_v25, %v2143_v33 }
 0x40c   :  { %v1249_v40 = vadd.f32 %v1247_v37, %v1239_v26  ;;  %v1250_v50 = vadd.f32 %v1247_v37, %v1240_v30  ;;  %v1251_v38 = vadd.f32 %v1247_v37, %v1241_v34  ;;  %v1252_v53 = vadd.f32 %v1247_v37, %v1242_v36 }
 0x40e   :  { %v1253_v31 = vadd.f32 %v1249_v40, %v1748_v18  ;;  %v1254_v27 = vadd.f32 %v1250_v50, %v1753_v19  ;;  %v1255_v54 = vadd.f32 %v1251_v38, %v1781_v28  ;;  %v1256_v56 = vadd.f32 %v1252_v53, %v1786_v29 }
 0x410   :  { %v1257_v6 = vmax.f32 %v1253_v31, 0.0  ;;  %v1258_v57 = vmax.f32 %v1254_v27, 0.0  ;;  %v1259_v61 = vmax.f32 %v1255_v54, 0.0  ;;  %v1260_v60 = vmax.f32 %v1256_v56, 0.0 }
 0x412   :  { %1261 = vst [vmem:[%s2275_s9] sm:$0xff] %v1257_v6  ;;  %1262 = vst [vmem:[%s2275_s9 + $0x8] sm:$0xff] %v1258_v57 }
 0x413   :  { %1263 = vst [vmem:[%s2275_s9 + $0x10] sm:$0xff] %v1259_v61  ;;  %1264 = vst [vmem:[%s2275_s9 + $0x18] sm:$0xff] %v1260_v60 }

</bundles_post_ra>
